<compile_context>
chip_gen: v7x
topology: tpu7x:2x2x1
jax: 0.10.0
libtpu: 0.0.40
codegen_flags: <defaults>
</compile_context>

<pallas_src>
import jax
import jax.numpy as jnp
from jax.experimental import pallas as pl
from jax.experimental.pallas import tpu as pltpu


def _round_up(x, m):
    return -(-x // m) * m


def _ceil_div(a, b):
    return -(-a // b)


def _vmem_capacity_bytes():
    try:
        return int(pltpu.get_tpu_info().vmem_capacity_bytes)
    except Exception:
        return 64 * 1024 * 1024          # v7x floor; safe (conservative) on v5e/v6e


def _make_kernel(dims, compute_dtype):
    """Kernel refs: x_0..x_{S-1} (tm, d_s), w (K, tn), bias (1, tn), out (tm, <=tn)."""
    n_streams = len(dims)
    offsets, off = [], 0
    for d in dims:
        offsets.append(off)
        off += d

    def kernel(*refs):
        x_refs = refs[:n_streams]
        w_ref = refs[n_streams]
        b_ref = refs[n_streams + 1]
        o_ref = refs[n_streams + 2]

        acc = None
        for s in range(n_streams):
            # In-kernel cast (free VPU op) instead of a wrapper-side XLA cast copy.
            x = x_refs[s][...].astype(compute_dtype)
            # Static K-split of the single weight tile (Python-int offsets at trace time).
            w = w_ref[offsets[s]:offsets[s] + dims[s], :]
            p = jnp.dot(x, w, preferred_element_type=jnp.float32)
            acc = p if acc is None else acc + p
        acc = acc + b_ref[...].astype(jnp.float32)
        # o_ref may be narrower than the padded acc (N_pad > output_dim, single N tile);
        # storing only the valid columns is a single masked vst — far cheaper than an
        # extra full-output HBM round trip for de-padding.
        o_ref[...] = acc[:, :o_ref.shape[1]].astype(o_ref.dtype)

    return kernel


def fused_concat_linear(streams, w_kn, bias_row, output_dim, *,
                        compute_dtype=jnp.float32, out_dtype=None,
                        tm_max=1024, tn_max=1024):
    """y = concat(streams, -1) @ W + b without materializing the concat.

    streams : list of (M, d_s) arrays (native dtype, cast in-kernel)
    w_kn    : (K, N_pad) pre-transposed weight, N_pad a multiple of 128
    bias_row: (1, N_pad) float32
    returns : (M, output_dim) array of out_dtype
    """
    out_dtype = compute_dtype if out_dtype is None else out_dtype
    M = int(streams[0].shape[0])
    dims = tuple(int(s.shape[-1]) for s in streams)
    K, n_pad = int(w_kn.shape[0]), int(w_kn.shape[1])
    assert sum(dims) == K, "stream dims must sum to K"

    w_size = jnp.dtype(w_kn.dtype).itemsize
    out_size = jnp.dtype(out_dtype).itemsize
    in_sizes = [jnp.dtype(s.dtype).itemsize for s in streams]

    vmem_cap = _vmem_capacity_bytes()
    budget = vmem_cap // 2               # tile buffers capped at half physical VMEM

    # ---- N tile: keep the whole weight resident when it fits; otherwise a multiple
    # of 256 (full MXU width on v6e/v7x) with a masked trailing tile.
    if 2 * K * n_pad * w_size <= budget // 2 or n_pad <= 256:
        tn = n_pad
    else:
        tn = 256
        for cand in (1024, 768, 512, 256):
            if cand <= tn_max and cand < n_pad and 2 * K * cand * w_size <= budget // 2:
                tn = cand
                break

    # ---- M tile: as large as the VMEM budget allows (this op is HBM-bound).
    def tile_bytes(tm_, tn_):
        b = 2 * sum(tm_ * d * sz for d, sz in zip(dims, in_sizes))   # streams (x2 buf)
        b += 2 * K * tn_ * w_size                                    # weight  (x2 buf)
        b += 2 * tn_ * 4                                             # bias
        b += 2 * tm_ * tn_ * out_size                                # output  (x2 buf)
        return b

    tm = tm_max if M > tm_max else M
    while tile_bytes(tm, tn) > budget and tm > 8:
        tm = max(8, _round_up(tm // 2, 8))

    # v7x has 2 TensorCores: never leave one idle on a single-program grid.
    if _ceil_div(M, tm) == 1 and _ceil_div(n_pad, tn) == 1 and M >= 16:
        tm = _round_up(_ceil_div(M, 2), 8)

    g_m = _ceil_div(M, tm)
    g_n = _ceil_div(n_pad, tn)

    # ---- Grid ordering: the operand that would be re-DMA'd more bytes gets the
    # outer (slow) axis, so it is fetched only once per outer step.
    stream_bytes = M * sum(d * sz for d, sz in zip(dims, in_sizes))
    weight_bytes = K * n_pad * w_size
    n_outer = (g_m > 1 and g_n > 1 and
               stream_bytes * (g_n - 1) < weight_bytes * (g_m - 1))

    if n_outer:
        grid = (g_n, g_m)
        x_map = lambda n, m: (m, 0)
        w_map = lambda n, m: (0, n)
        o_map = lambda n, m: (m, n)
    else:
        grid = (g_m, g_n)
        x_map = lambda m, n: (m, 0)
        w_map = lambda m, n: (0, n)
        o_map = lambda m, n: (m, n)

    # Single-N-tile case: emit the unpadded output width directly (one masked store).
    tn_out = output_dim if g_n == 1 else tn

    in_specs = [pl.BlockSpec((tm, d), x_map) for d in dims]
    in_specs.append(pl.BlockSpec((K, tn), w_map))          # single weight input
    in_specs.append(pl.BlockSpec((1, tn), w_map))          # padded bias row
    out_spec = pl.BlockSpec((tm, tn_out), o_map)
    # Note: if profiling shows exposed DMA latency on many tiny streams, add
    # pipeline_mode=pl.Buffered(3) to the stream BlockSpecs (cheap VMEM cost).

    need = tile_bytes(tm, tn)
    vmem_limit = min(int(vmem_cap * 0.85), max(need + (6 << 20), 32 << 20))

    return pl.pallas_call(
        _make_kernel(dims, compute_dtype),
        out_shape=jax.ShapeDtypeStruct((M, output_dim), out_dtype),
        grid_spec=pltpu.PrefetchScalarGridSpec(
            num_scalar_prefetch=0,
            grid=grid,
            in_specs=in_specs,
            out_specs=out_spec,
        ),
        compiler_params=pltpu.CompilerParams(
            # Both axes independent -> megacore sharding on v7x (2 TensorCores).
            dimension_semantics=("parallel", "parallel"),
            vmem_limit_bytes=vmem_limit,
        ),
    )(*streams, w_kn, bias_row)


class CombineEmbeddings:
    """JAX/Pallas port of the PyTorch CombineEmbeddings module (concat + Linear)."""

    def __init__(self, input_dim, output_dim, key,
                 compute_dtype=jnp.float32, out_dtype=None):
        kw, kb = jax.random.split(key)
        # Deterministic init mimicking nn.Linear's uniform(-1/sqrt(in), 1/sqrt(in)).
        bound = 1.0 / (input_dim ** 0.5)
        self.weight = jax.random.uniform(
            kw, (output_dim, input_dim), jnp.float32, -bound, bound)   # torch layout
        self.bias = jax.random.uniform(
            kb, (output_dim,), jnp.float32, -bound, bound)
        self.input_dim = input_dim
        self.output_dim = output_dim
        self.compute_dtype = compute_dtype
        self.out_dtype = compute_dtype if out_dtype is None else out_dtype

        # One-time kernel-side parameter prep:
        #   * pre-transpose to (K, N)         -> no per-call weight.T copy in HBM
        #   * zero-pad N to a multiple of 128 -> lane-dense weight/bias DMAs
        # NOTE: with compute_dtype=bf16 the stored weight is bf16 (halves weight HBM
        # traffic, native MXU rate); keep compute_dtype=f32 for exact torch parity.
        n_pad = _round_up(output_dim, 128)
        w_kn = self.weight.T
        b = self.bias
        if n_pad != output_dim:
            w_kn = jnp.pad(w_kn, ((0, 0), (0, n_pad - output_dim)))
            b = jnp.pad(b, (0, n_pad - output_dim))
        self.n_pad = n_pad
        self.w_kn = w_kn.astype(compute_dtype)                 # (K, N_pad)
        self.b_row = b.reshape(1, n_pad).astype(jnp.float32)   # bias added in f32

    def __call__(self, embeddings_list):
        dims = tuple(int(e.shape[-1]) for e in embeddings_list)
        assert sum(dims) == self.input_dim, "concat dims must sum to input_dim"
        lead_shape = embeddings_list[0].shape[:-1]
        # No HBM concat, no wrapper-side dtype cast: streams go to the kernel as-is.
        streams = [e.reshape(-1, d) for e, d in zip(embeddings_list, dims)]
        y2d = fused_concat_linear(streams, self.w_kn, self.b_row, self.output_dim,
                                  compute_dtype=self.compute_dtype,
                                  out_dtype=self.out_dtype)
        return y2d.reshape(*lead_shape, self.output_dim)


if __name__ == "__main__":
    key = jax.random.PRNGKey(0)
    k_e1, k_e2, k_mod = jax.random.split(key, 3)

    batch, seq = 2, 8
    d1, d2 = 16, 16                 # two embedding streams concatenated -> 32
    input_dim = d1 + d2
    output_dim = 32

    emb1 = jax.random.normal(k_e1, (batch, seq, d1), jnp.float32)
    emb2 = jax.random.normal(k_e2, (batch, seq, d2), jnp.float32)

    # Reference (same math as torch: cat -> F.linear), plain JAX.
    x_cat = jnp.concatenate([emb1, emb2], axis=-1)

    # f32 path — matches the PyTorch module semantics exactly.
    module = CombineEmbeddings(input_dim, output_dim, k_mod)
    out = module([emb1, emb2])
    jax.block_until_ready(out)
    ref = x_cat @ module.weight.T + module.bias
    assert out.shape == (batch, seq, output_dim)
    assert jnp.allclose(out, ref, atol=1e-4, rtol=1e-4)

    # bf16 compute path — streams stay in native f32 in HBM and are cast in-kernel;
    # weight stored bf16; f32 accumulation via preferred_element_type.
    module_bf16 = CombineEmbeddings(input_dim, output_dim, k_mod,
                                    compute_dtype=jnp.bfloat16)
    out_bf16 = module_bf16([emb1, emb2])
    jax.block_until_ready(out_bf16)
    assert out_bf16.shape == (batch, seq, output_dim)
    assert jnp.allclose(out_bf16.astype(jnp.float32), ref, atol=5e-2, rtol=5e-2)

    print("KERNEL_OK")
</pallas_src>

<mosaic_0001>
module attributes {stable_mosaic.version = 11 : i64} {
  func.func @kernel(%arg0: i32, %arg1: i32, %arg2: memref<8x16xf32, #tpu.memory_space<vmem>>, %arg3: memref<8x16xf32, #tpu.memory_space<vmem>>, %arg4: memref<32x128xf32, #tpu.memory_space<vmem>>, %arg5: memref<1x128xf32, #tpu.memory_space<vmem>>, %arg6: memref<8x32xf32, #tpu.memory_space<vmem>>) attributes {dimension_semantics = [#tpu.dimension_semantics<parallel>, #tpu.dimension_semantics<parallel>], iteration_bounds = array<i64: 2, 1>, scalar_prefetch = 0 : i64, scratch_operands = 0 : i64, tpu.core_type = #tpu.core_type<tc>, window_params = [{transform_indices = @transform_0, window_bounds = array<i64: 8, 16>}, {transform_indices = @transform_1, window_bounds = array<i64: 8, 16>}, {transform_indices = @transform_2, window_bounds = array<i64: 32, 128>}, {transform_indices = @transform_3, window_bounds = array<i64: 1, 128>}, {transform_indices = @transform_4, window_bounds = array<i64: 8, 32>}]} {
    %c0 = arith.constant 0 : index
    %c0_0 = arith.constant 0 : index
    %0 = vector.load %arg2[%c0, %c0_0] : memref<8x16xf32, #tpu.memory_space<vmem>>, vector<8x16xf32>
    %c0_1 = arith.constant 0 : index
    %c0_2 = arith.constant 0 : index
    %1 = vector.load %arg4[%c0_1, %c0_2] : memref<32x128xf32, #tpu.memory_space<vmem>>, vector<16x128xf32>
    %cst = arith.constant dense<0.000000e+00> : vector<8x128xf32>
    %2 = tpu.matmul %0, %1, %cst {dimension_numbers = #tpu.dot_dimension_numbers<[1], [0], [0], [1], [0, 0, 1, 1], [], []>} : vector<8x16xf32>, vector<16x128xf32>, vector<8x128xf32> -> vector<8x128xf32>
    %c0_3 = arith.constant 0 : index
    %c0_4 = arith.constant 0 : index
    %3 = vector.load %arg3[%c0_3, %c0_4] : memref<8x16xf32, #tpu.memory_space<vmem>>, vector<8x16xf32>
    %c16 = arith.constant 16 : index
    %c0_5 = arith.constant 0 : index
    %4 = vector.load %arg4[%c16, %c0_5] : memref<32x128xf32, #tpu.memory_space<vmem>>, vector<16x128xf32>
    %cst_6 = arith.constant dense<0.000000e+00> : vector<8x128xf32>
    %5 = tpu.matmul %3, %4, %cst_6 {dimension_numbers = #tpu.dot_dimension_numbers<[1], [0], [0], [1], [0, 0, 1, 1], [], []>} : vector<8x16xf32>, vector<16x128xf32>, vector<8x128xf32> -> vector<8x128xf32>
    %6 = arith.addf %2, %5 : vector<8x128xf32>
    %c0_7 = arith.constant 0 : index
    %c0_8 = arith.constant 0 : index
    %7 = vector.load %arg5[%c0_7, %c0_8] : memref<1x128xf32, #tpu.memory_space<vmem>>, vector<1x128xf32>
    %8 = vector.broadcast %7 : vector<1x128xf32> to vector<8x128xf32>
    %9 = arith.addf %6, %8 : vector<8x128xf32>
    %10 = vector.extract_strided_slice %9 {offsets = [0, 0], sizes = [8, 32], strides = [1, 1]} : vector<8x128xf32> to vector<8x32xf32>
    %c0_9 = arith.constant 0 : index
    %c0_10 = arith.constant 0 : index
    %11 = vector.load %arg6[%c0_9, %c0_10] : memref<8x32xf32, #tpu.memory_space<vmem>>, vector<8x32xf32>
    tpu.vector_store %arg6[%c0_9, %c0_10], %10 {strides = array<i32>} : memref<8x32xf32, #tpu.memory_space<vmem>>, vector<8x32xf32>,
    return
  }
  func.func @transform_0(%arg0: i32, %arg1: i32) -> (i32, i32) {
    %c0_i32 = arith.constant 0 : i32
    %c0_i32_0 = arith.constant 0 : i32
    return %arg0, %c0_i32 : i32, i32
  }
  func.func @transform_1(%arg0: i32, %arg1: i32) -> (i32, i32) {
    %c0_i32 = arith.constant 0 : i32
    %c0_i32_0 = arith.constant 0 : i32
    return %arg0, %c0_i32 : i32, i32
  }
  func.func @transform_2(%arg0: i32, %arg1: i32) -> (i32, i32) {
    %c0_i32 = arith.constant 0 : i32
    %c0_i32_0 = arith.constant 0 : i32
    return %c0_i32, %arg1 : i32, i32
  }
  func.func @transform_3(%arg0: i32, %arg1: i32) -> (i32, i32) {
    %c0_i32 = arith.constant 0 : i32
    %c0_i32_0 = arith.constant 0 : i32
    return %c0_i32, %arg1 : i32, i32
  }
  func.func @transform_4(%arg0: i32, %arg1: i32) -> (i32, i32) {
    %c0_i32 = arith.constant 0 : i32
    return %arg0, %arg1 : i32, i32
  }
}

</mosaic_0001>

<bundles_post_ra>
// kernel: tpu_custom_call.1
= control target key start
LH: loop header
LB: loop body
LE: loop exit
PB: predicated region body
PF: predicated region fallthrough
CT: control target
= control target key end

     0   :  { %s1201_s0 = inlined_call_operand.hbm [shape: f32[16,16], index: 0, kind: input, shape index: {}]   ;;  %s1202_s1 = inlined_call_operand.hbm [shape: f32[16,16], index: 1, kind: input, shape index: {}]   ;;  %s1203_s2 = inlined_call_operand.hbm [shape: f32[32,128], index: 2, kind: input, shape index: {}]   ;;  %s1204_s3 = inlined_call_operand.vmem [shape: f32[1,128], index: 3, kind: input, shape index: {}]   ;;  %s1205_s4 = inlined_call_operand.hbm [shape: f32[16,32], index: 4, kind: output, shape index: {}]  }
   0x1   :  { %1212 = sst [smem:[#allocation15_spill]] %s1203_s2 }
   0x2   :  { %9 = vsyncpa [#allocation3], 0 }
   0x3   :  { %11 = vsyncpa [#allocation3 + $0x1], 0 }
   0x4   :  { %12 = vsyncpa [#allocation6], 0 }
   0x5   :  { %14 = vsyncpa [#allocation6 + $0x1], 0 }
   0x6   :  { %15 = vsyncpa [#allocation4], 0 }
   0x7   :  { %17 = vsyncpa [#allocation4 + $0x1], 0  ;;  %s947_s15 = smov 0   ;;  %s949_s16 = smov 0  }
   0x8   :  { %s951_s17 = smov 0   ;;  %s953_s18 = smov 0  }
   0x9   :  { %s955_s19 = smov 0   ;;  %s957_s20 = smov 0  }
   0xa LB: > { %1213 = sst [smem:[#allocation13_spill]] %s907_s19  ;;  %s978_s21 = sadd.s32 4294967295, %s911_s20   ;;  %s911_s20 = sphi %s957_s20, %s23_s20   ;;  %s907_s19 = sphi %s955_s19, %s1232_s19   ;;  %s903_s18 = sphi %s953_s18, %s1231_s18   ;;  %s899_s17 = sphi %s951_s17, %s1235_s17   ;;  %s895_s16 = sphi %s949_s16, %s1234_s16   ;;  %s891_s15 = sphi %s947_s15, %s1233_s15  }
   0xb   : > { %s603_s22 = sadd.s32 4294967294, %s911_s20   ;;  %p55_p0 = scmp.ne.s32.totalorder %s895_s16, %s891_s15 }
   0xc   : > { %p1206_p1 = scmp.eq.s32.totalorder %s978_s21, 0  ;;  %p165_p3 = scmp.eq.s32.totalorder %s603_s22, 1 }
   0xd   : > { %p604_p5 = scmp.ge.s32.totalorder %s911_s20, 1  ;;  %p172_p7 = scmp.lt.s32.totalorder %s911_s20, 3 }
   0xe   : > { %p987_p4 = por %p1206_p1, %p55_p0  ;;  %p992_p6 = por %p165_p3, %p55_p0 }
   0xf   : > { %p997_p8 = pnand %p604_p5, %p172_p7  ;;  %s913_s26 = smov [#allocation7]  }
  0x10   : > { %s1214_s23 = scalar_select %p987_p4, 1, 0 }
  0x11   : > { %s1215_s24 = scalar_select %p992_p6, 1, 0 }
  0x12   : > { %s1216_s25 = scalar_select %p997_p8, 1, 0 }
  0x13   : > { %s186_s27 = sshll.u32 %s913_s26, 4  ;;  %p660_p9 = pneg %p997_p8  ;;  %s187_s27 = int_to_ptr.vmem [resolvable:$true] %s186_s27 }
  0x14   : > { %s35_s29 = sadd.s32 1, %s907_s19  ;;  %s1218_s2 = sld [smem:[#allocation15_spill]] }
  0x15   : > { %p1006_p11 = pnand %p660_p9, %p1206_p1 }
  0x17   : > { %p735_p13 = pneg %p1006_p11 }
  0x1a   : > { %s733_s6 = scalar_lea.hbm %s1218_s2, 512 }
  0x1b   : > { %p734_p12 = scmp.ne.s32.totalorder %s1218_s2, %s733_s6  ;;  %p740_p5 = scmp.lt.u32.totalorder %s733_s6, %s1218_s2 }
  0x1d   : > { %p736_p0 = pnand %p735_p13, %p734_p12 }
  0x1f   : > { %p737_p3 = pneg %p736_p0 }
  0x21   : > { %p742_p7 = pnand %p740_p5, %p737_p3 }
  0x23   : > { %745 = shalt.err (!%p742_p7)
}
  0x24   : > { %s746_s11 = scalar_lea.vmem %s187_s27, 512  ;;  %p754_p2 = scmp.lt.s32.totalorder %s187_s27, %s187_s27 }
  0x25   : > { %p747_p9 = scmp.ne.s32.totalorder %s187_s27, %s746_s11  ;;  %p755_p6 = scmp.lt.s32.totalorder %s746_s11, %s746_s11 }
  0x27   : > { %p749_p10 = pnand %p747_p9, %p735_p13  ;;  %p756_p4 = por %p755_p6, %p754_p2 }
  0x29   : > { %p750_p1 = pneg %p749_p10 }
  0x2b   : > { %p757_p8 = pnand %p756_p4, %p750_p1 }
  0x2d   : > { %760 = shalt.err (!%p757_p8)
}
  0x2e   : > { %s914_s12 = smov 128   ;;  %s915_s13 = smov 8  }
  0x2f   : > { %663 = dma.hbm_to_vmem [thread:$0]  (!%p1006_p11), %s1218_s2, 512, %s187_s27, [#allocation6], %s914_s12, %s914_s12, %s915_s13  }
  0x30   : > { %p37_p1 = scmp.ge.s32.totalorder %s35_s29, 2  ;;  %s42_s26 = sadd.s32 1, %s899_s17 }
  0x31   : > { %p49_p2 = scmp.ne.s32.totalorder %s899_s17, %s895_s16  ;;  %p50_p4 = scmp.eq.s32.totalorder %s911_s20, 0 }
  0x32   : > { %s1237_s29 = smov (%p37_p1, %s35_s29), 0  ;;  %p1221_p8 = scmp.eq.s32.totalorder %s978_s21, 1 }
  0x33   : > { %1219 = sst [smem:[#allocation14_spill]] %s1237_s29  ;;  %p1033_p6 = por %p50_p4, %p49_p2 }
  0x34   : > { %p1039_p10 = por %p1221_p8, %p49_p2  ;;  %s39_s5 = ssub.s32 %s907_s19, %s1237_s29 }
  0x35   : > { %p676_p11 = scmp.lt.s32.totalorder %s911_s20, 2  ;;  %p40_p12 = scmp.eq.s32.totalorder %s39_s5, 0 }
  0x36   : > { %s1222_s28 = scalar_select %p1039_p10, 1, 0 }
  0x37   : > { %s206_s27 = sand.u32 1, %s899_s17   ;;  %s609_s8 = sshll.u32 %s907_s19, 7 }
  0x38   : > { %s1047_s6 = sshll.u32 %s206_s27, 3  ;;  %s1056_s11 = scalar_lea.hbm %s1201_s0, %s609_s8 }
  0x39   : > { %s1050_s7 = scalar_select %p40_p12, %s899_s17, %s42_s26  }
  0x3a   : > { %s210_s12 = scalar_lea.vmem [#allocation2], %s1047_s6  ;;  %p1063_p13 = pnand %p676_p11, %p1033_p6 }
  0x3b   : > { %s217_s13 = sshll.u32 %s210_s12, 4  ;;  %s1070_s5 = scalar_lea.hbm %s1202_s1, %s609_s8  ;;  %s1059_s13 = int_to_ptr.vmem [resolvable:$true] %s217_s13 }
  0x3c   : > { %s224_s9 = sand.u32 1, %s911_s20   ;;  %s207_s10 = scalar_lea.sflag [#allocation3], %s206_s27 }
  0x3d   : > { %s761_s2 = scalar_lea.hbm %s1056_s11, 128  ;;  %p763_p3 = pneg %p1063_p13 }
  0x3e   : > { %p762_p0 = scmp.ne.s32.totalorder %s1056_s11, %s761_s2  ;;  %s766_s29 = scalar_lea.hbm %s1201_s0, 256 }
  0x3f   : > { %p767_p9 = scmp.lt.u32.totalorder %s1056_s11, %s1201_s0  ;;  %p768_p1 = scmp.lt.u32.totalorder %s766_s29, %s761_s2 }
  0x40   : > { %p764_p5 = pnand %p763_p3, %p762_p0  ;;  %p770_p4 = scmp.lt.u32.totalorder %s761_s2, %s1056_s11 }
  0x41   : > { %p769_p2 = por %p768_p1, %p767_p9 }
  0x42   : > { %p765_p7 = pneg %p764_p5 }
  0x43   : > { %p771_p6 = por %p770_p4, %p769_p2 }
  0x45   : > { %p772_p8 = pnand %p771_p6, %p765_p7 }
  0x47   : > { %775 = shalt.err (!%p772_p8)
}
  0x48   : > { %s776_s27 = scalar_lea.vmem %s1059_s13, 128  ;;  %s916_s8 = smov [#allocation2]  }
  0x49   : > { %p777_p11 = scmp.ne.s32.totalorder %s1059_s13, %s776_s27  ;;  %s781_s26 = sshll.u32 %s916_s8, 4  ;;  %s782_s26 = int_to_ptr.vmem [resolvable:$false] %s781_s26 }
  0x4a   : > { %s783_s19 = scalar_lea.vmem %s782_s26, 256  ;;  %p784_p5 = scmp.lt.s32.totalorder %s1059_s13, %s782_s26 }
  0x4b   : > { %p779_p12 = pnand %p777_p11, %p763_p3  ;;  %p785_p9 = scmp.lt.s32.totalorder %s783_s19, %s776_s27 }
  0x4d   : > { %p780_p0 = pneg %p779_p12  ;;  %p786_p1 = por %p785_p9, %p784_p5 }
  0x4f   : > { %p787_p2 = pnand %p786_p1, %p780_p0 }
  0x51   : > { %790 = shalt.err (!%p787_p2)
}
  0x52   : > { %667 = dma.hbm_to_vmem [thread:$0]  (!%p1063_p13), %s1056_s11, 128, %s1059_s13, %s207_s10  }
  0x53   : > { %s228_s2 = scalar_lea.vmem [#allocation5], %s1047_s6  ;;  %s225_s30 = scalar_lea.sflag [#allocation6], %s224_s9 }
  0x54   : > { %s235_s29 = sshll.u32 %s228_s2, 4  ;;  %s791_s12 = scalar_lea.hbm %s1070_s5, 128  ;;  %s236_s29 = int_to_ptr.vmem [resolvable:$true] %s235_s29 }
  0x55   : > { %p792_p7 = scmp.ne.s32.totalorder %s1070_s5, %s791_s12  ;;  %s796_s8 = scalar_lea.hbm %s1202_s1, 256 }
  0x56   : > { %p797_p8 = scmp.lt.u32.totalorder %s1070_s5, %s1202_s1  ;;  %p798_p11 = scmp.lt.u32.totalorder %s796_s8, %s791_s12 }
  0x57   : > { %p794_p4 = pnand %p792_p7, %p763_p3  ;;  %p800_p0 = scmp.lt.u32.totalorder %s791_s12, %s1070_s5 }
  0x58   : > { %p799_p12 = por %p798_p11, %p797_p8 }
  0x59   : > { %p795_p6 = pneg %p794_p4 }
  0x5a   : > { %p801_p5 = por %p800_p0, %p799_p12 }
  0x5c   : > { %p802_p9 = pnand %p801_p5, %p795_p6 }
  0x5e   : > { %805 = shalt.err (!%p802_p9)
}
  0x5f   : > { %s806_s6 = scalar_lea.vmem %s236_s29, 128  ;;  %s917_s11 = smov [#allocation5]  }
  0x60   : > { %p807_p1 = scmp.ne.s32.totalorder %s236_s29, %s806_s6  ;;  %s811_s13 = sshll.u32 %s917_s11, 4  ;;  %s812_s13 = int_to_ptr.vmem [resolvable:$false] %s811_s13 }
  0x61   : > { %s813_s9 = scalar_lea.vmem %s812_s13, 256  ;;  %p814_p4 = scmp.lt.s32.totalorder %s236_s29, %s812_s13 }
  0x62   : > { %p809_p2 = pnand %p807_p1, %p763_p3  ;;  %p815_p10 = scmp.lt.s32.totalorder %s813_s9, %s806_s6 }
  0x64   : > { %p810_p7 = pneg %p809_p2  ;;  %p816_p8 = por %p815_p10, %p814_p4 }
  0x66   : > { %p817_p11 = pnand %p816_p8, %p810_p7 }
  0x68   : > { %820 = shalt.err (!%p817_p11)
}
  0x69   : > { %670 = dma.hbm_to_vmem [thread:$0]  (!%p1063_p13), %s1070_s5, 128, %s236_s29, %s225_s30  }
  0x6a   : > { %p1224_p6 = scmp.ne.s32.totalorder %s1216_s25, 0 }
  0x6b   : > { %s1123_s10 = sand.u32 (!%p1224_p6), 1, %s895_s16   ;;  %p1225_p10 = scmp.ne.s32.totalorder (!%p1224_p6), %s1214_s23, 0 }
  0x6c   : > { %244 = sbr.rel (%p1224_p6) target bundleno = 359 (0x167), region = 36  ;;  %s1126_s2 = sshll.u32 (!%p1224_p6), %s1123_s10, 3 }
  0x6d   : > { %s247_s12 = scalar_lea.sflag (!%p1224_p6), [#allocation3], %s1123_s10  ;;  %s250_s22 = scalar_lea.vmem (!%p1224_p6), [#allocation2], %s1126_s2 }
  0x73   : > { %874 = dma.done.wait (%p1225_p10), %s247_s12, 128  }
  0x74   : > { %876 = vsyncadd (%p1225_p10), %s247_s12, 4294967168  ;;  %s255_s25 = sand.u32 1, %s978_s21   ;;  %s259_s5 = scalar_lea.vmem [#allocation5], %s1126_s2 }
  0x75   : > { %s256_s14 = scalar_lea.sflag [#allocation6], %s255_s25 }
  0x76   : > { %878 = dma.done.wait (%p1225_p10), %s256_s14, 128  }
  0x77   : > { %880 = vsyncadd (%p1225_p10), %s256_s14, 4294967168  ;;  %p1226_p13 = scmp.eq.s32.totalorder %s978_s21, 0 }
  0x79   : > { %882 = dma.done.wait (%p1226_p13), [#allocation6], 512   ;;  %p1227_p3 = pmov %p1226_p13 }
  0x7a   : > { %v918_v0 = vmov 0.0|0.0   ;;  %vm919_vm0 = vmmov 0   ;;  %v920_v1 = vmov 0.0   ;;  %v303_v2 = vld [vmem:[#allocation7 + $0x10] sm:$0xff]  ;;  %v304_v3 = vld [vmem:[#allocation7 + $0x18] sm:$0xff]  ;;  %v300_v4 = vld [vmem:[#allocation7] sm:$0xff] }
  0x7b   : > { %884 = vsyncadd (%p1227_p3), [#allocation6], 4294966784  ;;  %644 = vmatprep.subr.bf16.mxu0 %v918_v0  ;;  %647 = vmatprep.subr.bf16.mxu1 %v918_v0  ;;  %v645_v5 = vpack.c.bf16 %v304_v3, %v303_v2  ;;  %v301_v6 = vld [vmem:[#allocation7 + $0x8] sm:$0xff]  ;;  %v302_v8 = vld [vmem:[%s259_s5] sm:$0xff]  ;;  %vm305_vm1 = vcmask 130048   ;;  %s621_s29 = sshll.u32 %s903_s18, 7 }
  0x7c   : > { %634 = vmatprep.mubr.msk.f32.mxu0 %vm919_vm0, %v920_v1  ;;  %641 = vmatprep.mubr.msk.f32.mxu1 %vm919_vm0, %v920_v1  ;;  %v648_v7 = vpack.c.bf16 %v301_v6, %v300_v4  ;;  %v299_v9 = vld [vmem:[%s250_s22] sm:$0xff]  ;;  %s295_s30 = scalar_lea.vmem [#allocation8], %s1126_s2  ;;  %vm460_vm2 = vcmask 261120   ;;  %s1152_s19 = scalar_lea.hbm %s1205_s4, %s621_s29 }
  0x7d   : > { %646 = vmatpush3.bf16.msra.mxu0 %v645_v5  ;;  %v619_v12 = vld [vmem:[%s1204_s3] ss:$0 sm:$0xff]  ;;  %s477_s27 = sshll.u32 %s295_s30, 4  ;;  %s463_s6 = scalar_lea.sflag [#allocation4], %s1123_s10  ;;  %s1154_s27 = int_to_ptr.vmem [resolvable:$true] %s477_s27 }
  0x7e   : > { %649 = vmatpush3.bf16.msra.mxu1 %v648_v7  ;;  %s821_s11 = scalar_lea.vmem %s1154_s27, 128  ;;  %p1228_p0 = scmp.ne.s32.totalorder %s1222_s28, 0 }
  0x7f   : > { %p822_p12 = scmp.ne.s32.totalorder %s1154_s27, %s821_s11  ;;  %s921_s18 = smov [#allocation8]  }
  0x80   : > { %635 = vmatmul.mubr.msk.f32.vlgmr.msra.gmra.mrb[0].mxu0 %vm305_vm1, %v302_v8  ;;  %s825_s13 = sshll.u32 %s921_s18, 4  ;;  %s826_s13 = int_to_ptr.vmem [resolvable:$false] %s825_s13 }
  0x81   : > { %642 = vmatmul.mubr.msk.f32.vlgmr.msra.gmra.mrb[0].mxu1 %vm305_vm1, %v299_v9  ;;  %p823_p5 = pnand %p822_p12, %p1228_p0  ;;  %s827_s9 = scalar_lea.vmem %s826_s13, 256 }
  0x82   : > { %p828_p1 = scmp.lt.s32.totalorder %s1154_s27, %s826_s13  ;;  %p829_p2 = scmp.lt.s32.totalorder %s827_s9, %s821_s11 }
  0x83   : > { %p824_p9 = pneg %p823_p5 }
  0x84   : > { %p830_p7 = por %p829_p2, %p828_p1 }
  0x86   : > { %p831_p4 = pnand %p830_p7, %p824_p9 }
 0x153   : > { %v375_v10 = vpop.f32.mrb[0].mxu0 }
 0x154   : > { %v448_v11 = vpop.f32.mrb[0].mxu1  ;;  %v636_v13 = vpop.f32.mrb[1].mxu0 }
 0x155   : > { %v449_v14 = vadd.f32 %v448_v11, %v375_v10  ;;  %v643_v15 = vpop.f32.mrb[1].mxu1 }
 0x157   : > { %v459_v16 = vadd.f32 %v619_v12, %v449_v14 }
 0x159   : > { %461 = vst.msk [vmem:[%s295_s30] sm:$0xff] %vm460_vm2, %v459_v16 }
 0x15a   : > { %834 = shalt.err (!%p831_p4)
}
 0x15b   : > { %s835_s10 = scalar_lea.hbm %s1152_s19, 128  ;;  %s839_s22 = scalar_lea.hbm %s1205_s4, 256 }
 0x15c   : > { %p836_p8 = scmp.ne.s32.totalorder %s1152_s19, %s835_s10  ;;  %p840_p10 = scmp.lt.u32.totalorder %s1152_s19, %s1205_s4 }
 0x15d   : > { %p841_p13 = scmp.lt.u32.totalorder %s839_s22, %s835_s10  ;;  %p843_p12 = scmp.lt.u32.totalorder %s835_s10, %s1152_s19 }
 0x15e   : > { %p837_p11 = pnand %p836_p8, %p1228_p0 }
 0x15f   : > { %p842_p3 = por %p841_p13, %p840_p10 }
 0x160   : > { %p838_p6 = pneg %p837_p11 }
 0x161   : > { %p844_p5 = por %p843_p12, %p842_p3 }
 0x163   : > { %p845_p9 = pnand %p844_p5, %p838_p6 }
 0x165   : > { %848 = shalt.err (!%p845_p9)
}
 0x166   : > { %658 = dma.vmem_to_hbm [thread:$0]  (%p1228_p0), %s1154_s27, 128, %s1152_s19, %s463_s6  }
 0x167 PF: > { %s489_s5 = sand.u32 1, %s891_s15   ;;  %p1229_p1 = scmp.ne.s32.totalorder %s1215_s24, 0 }
 0x168   : > { %p1230_p2 = scmp.ge.s32.totalorder %s911_s20, 2  ;;  %s490_s21 = scalar_lea.sflag [#allocation4], %s489_s5 }
 0x16a   : > { %p672_p7 = pnand %p1230_p2, %p1229_p1 }
 0x16c   : > { %886 = dma.done.wait (!%p672_p7), %s490_s21, 128  }
 0x16d   : > { %888 = vsyncadd (!%p672_p7), %s490_s21, 4294967168  ;;  %s23_s20 = sadd.s32 1, %s911_s20   ;;  %s1231_s18 = sld [smem:[#allocation13_spill]] }
 0x16e   : > { %p20_p4 = scmp.ge.s32.totalorder %s23_s20, 4   ;;  %s1232_s19 = sld [smem:[#allocation14_spill]] }
 0x16f   : > { %s1233_s15 = smov %s895_s16  ;;  %s1234_s16 = smov %s899_s17 }
 0x170   : > { %s1235_s17 = smov %s1050_s7  ;;  %22 = sbr.rel (!%p20_p4) target bundleno = 10 (0xa), region = 102 }
 0x177   :  { %495 = vsyncpa [#allocation3], 1 }
 0x178   :  { %497 = vsyncpa [#allocation3 + $0x1], 1 }
 0x179   :  { %498 = vsyncpa [#allocation6], 1 }
 0x17a   :  { %500 = vsyncpa [#allocation6 + $0x1], 1 }
 0x17b   :  { %501 = vsyncpa [#allocation4], 1 }
 0x17c   :  { %503 = vsyncpa [#allocation4 + $0x1], 1 }

</bundles_post_ra>
